<compile_context>
chip_gen: v5e
topology: v5e:2x2
jax: 0.10.0
libtpu: 0.0.40
codegen_flags: <defaults>
</compile_context>

<pallas_src>
import jax
import jax.numpy as jnp
from jax.experimental import pallas as pl
from jax.experimental.pallas import tpu as pltpu


_CONST = 1e-8
_F32_MAX = float(jnp.finfo(jnp.float32).max)
# ~4 MiB of the I/O dtype per block: >= 2 MiB blocks measured at 85%+ of HBM
# roofline; double-buffered in + out at 4 MiB is 16 MiB, under the 32 MiB
# scoped-VMEM limit we request on every generation (v5e/v6e/v7x).
_TARGET_BLOCK_BYTES = 4 * 1024 * 1024


def _silu_xai_kernel(x_ref, o_ref):
    x = x_ref[...].astype(jnp.float32)
    # Fused denominator: silu(x)/(x+c) == x / ((1 + exp(-x)) * (x + c)),
    # so out = x * (x * rcp(denom)).  One exp + one reciprocal total.
    denom = (1.0 + jnp.exp(-x)) * (x + _CONST)
    r = pl.reciprocal(denom, approx=True)     # EUP vrcp (free slot)
    r = r * (2.0 - denom * r)                 # one Newton-Raphson step -> ~f32 exact
    # Group as x * (x * r): the ratio (x * r) stays O(1), avoiding the x*x
    # overflow the naive grouping would hit for |x| > sqrt(f32max).
    out = x * (x * r)
    # Cheap nan_to_num: clip handles +/-inf -> +/-f32max, then a single NaN
    # select (NaN propagates through clip) maps NaN -> 0.  Matches
    # torch.nan_to_num for every value this expression can produce.
    out = jnp.clip(out, -_F32_MAX, _F32_MAX)
    out = jnp.where(jnp.isnan(out), 0.0, out)
    o_ref[...] = out.astype(o_ref.dtype)


def _round_up(a: int, b: int) -> int:
    return (a + b - 1) // b * b


def _choose_layout(n: int, itemsize: int):
    """Pick (lane_width, padded_n, rows, tile_rows) for a flat length n."""
    # Prefer the widest last dim that divides n exactly, so the wrapper never
    # needs a pad / un-pad copy (each is an extra full HBM pass for a
    # memory-bound op).  Fall back to padding to 128 lanes only if necessary.
    lane_width = 128
    for w in (2048, 1024, 512, 256, 128):
        if n % w == 0:
            lane_width = w
            break
    padded_n = _round_up(n, lane_width)
    rows = padded_n // lane_width

    # Sublane alignment per dtype packing: f32 -> 8, bf16 -> 16, int8/fp8 -> 32.
    row_align = max(8, 32 // max(itemsize, 1))

    # Byte-based block target so bf16/fp8 get blocks as large as f32.
    block_elems = max(_TARGET_BLOCK_BYTES // itemsize, lane_width * row_align)
    tile_rows = max(row_align, (block_elems // lane_width) // row_align * row_align)

    if tile_rows >= rows:
        if rows >= 2 * row_align:
            # Force grid >= 2 so both v7x TensorCores get work (the extra grid
            # step costs only ~0.35 us on single-TC v5e/v6e).
            tile_rows = _round_up(pl.cdiv(rows, 2), row_align)
        else:
            # Tiny slab: single block spanning the full array.
            tile_rows = rows
    return lane_width, padded_n, rows, tile_rows


def silu_xai(x: jax.Array) -> jax.Array:
    """SiLUXAI forward, element-wise, for floating-point inputs of any shape."""
    orig_shape = x.shape
    orig_dtype = x.dtype
    itemsize = jnp.dtype(orig_dtype).itemsize

    flat = x.reshape(-1)
    n = flat.shape[0]
    lane_width, padded_n, rows, tile_rows = _choose_layout(n, itemsize)
    if padded_n != n:
        # Rare path (n not a multiple of 128): costs an extra HBM pass.
        # TODO(synk): handle the <128-element tail with a masked store instead
        # of pad + slice to avoid the 2x-traffic cliff on unaligned sizes.
        flat = jnp.pad(flat, (0, padded_n - n))
    slab = flat.reshape(rows, lane_width)

    grid = (pl.cdiv(rows, tile_rows),)

    out = pl.pallas_call(
        _silu_xai_kernel,
        out_shape=jax.ShapeDtypeStruct((rows, lane_width), orig_dtype),
        grid_spec=pltpu.PrefetchScalarGridSpec(
            num_scalar_prefetch=0,
            grid=grid,
            # NOTE: if xprof shows exposed DMA between steps, sweep
            # pipeline_mode=pl.Buffered(3) on the input spec (VMEM headroom
            # exists); expected 0-3%, revert if neutral.
            in_specs=[pl.BlockSpec((tile_rows, lane_width), lambda i: (i, 0))],
            out_specs=pl.BlockSpec((tile_rows, lane_width), lambda i: (i, 0)),
        ),
        compiler_params=pltpu.CompilerParams(
            dimension_semantics=("parallel",),   # shards grid across v7x TCs
            vmem_limit_bytes=32 * 1024 * 1024,   # above v5e's 16 MiB default,
                                                 # safe on all generations
        ),
        cost_estimate=pl.CostEstimate(
            flops=10 * padded_n,
            transcendentals=2 * padded_n,        # exp + approx rcp
            bytes_accessed=2 * padded_n * itemsize,
        ),
    )(slab)

    if padded_n != n:
        return out.reshape(-1)[:n].reshape(orig_shape)
    return out.reshape(orig_shape)


def _reference(x: jax.Array) -> jax.Array:
    x32 = x.astype(jnp.float32)
    func = x32 * jax.nn.sigmoid(x32)
    out = x32 * (func / (x32 + _CONST))
    out = jnp.nan_to_num(out)
    return out.astype(x.dtype)


if __name__ == "__main__":
    key = jax.random.PRNGKey(0)
    # NCHW input consistent with typical usage of this activation.
    x = jax.random.normal(key, (2, 4, 16, 16), dtype=jnp.float32)

    y = jax.block_until_ready(silu_xai(x))
    y_ref = _reference(x)
    assert y.shape == x.shape and y.dtype == x.dtype
    assert jnp.allclose(y, y_ref, atol=1e-4, rtol=1e-4)

    # Multi-block path (grid >= 2, ragged-free layout), still small & fast.
    x2 = jax.random.normal(jax.random.PRNGKey(1), (4, 32, 64, 64),
                           dtype=jnp.float32)
    y2 = jax.block_until_ready(silu_xai(x2))
    assert jnp.allclose(y2, _reference(x2), atol=1e-4, rtol=1e-4)

    # bf16 I/O path (different tile packing + downcast on store).
    x3 = jax.random.normal(jax.random.PRNGKey(2), (2, 8, 32, 32),
                           dtype=jnp.bfloat16)
    y3 = jax.block_until_ready(silu_xai(x3))
    assert y3.dtype == jnp.bfloat16
    assert jnp.allclose(y3.astype(jnp.float32),
                        _reference(x3).astype(jnp.float32),
                        atol=2e-2, rtol=2e-2)

    print("KERNEL_OK")
</pallas_src>

<mosaic_0001>
module attributes {stable_mosaic.version = 11 : i64} {
  func.func @_silu_xai_kernel(%arg0: i32, %arg1: memref<1x2048xf32, #tpu.memory_space<vmem>>, %arg2: memref<1x2048xf32, #tpu.memory_space<vmem>>) attributes {dimension_semantics = [#tpu.dimension_semantics<parallel>], iteration_bounds = array<i64: 1>, scalar_prefetch = 0 : i64, scratch_operands = 0 : i64, tpu.core_type = #tpu.core_type<tc>, window_params = [{transform_indices = @transform_0, window_bounds = array<i64: 1, 2048>}, {transform_indices = @transform_1, window_bounds = array<i64: 1, 2048>}]} {
    %c0 = arith.constant 0 : index
    %c0_0 = arith.constant 0 : index
    %0 = vector.load %arg1[%c0, %c0_0] : memref<1x2048xf32, #tpu.memory_space<vmem>>, vector<1x2048xf32>
    %cst = arith.constant 0.000000e+00 : f32
    %1 = vector.broadcast %cst : f32 to vector<1x2048xf32>
    %2 = arith.subf %1, %0 : vector<1x2048xf32>
    %3 = math.exp %2 : vector<1x2048xf32>
    %cst_1 = arith.constant 1.000000e+00 : f32
    %4 = vector.broadcast %cst_1 : f32 to vector<1x2048xf32>
    %5 = arith.addf %4, %3 : vector<1x2048xf32>
    %cst_2 = arith.constant 9.99999993E-9 : f32
    %6 = vector.broadcast %cst_2 : f32 to vector<1x2048xf32>
    %7 = arith.addf %0, %6 : vector<1x2048xf32>
    %8 = arith.mulf %5, %7 : vector<1x2048xf32>
    %9 = tpu.reciprocal %8 {approx = true} : vector<1x2048xf32> -> vector<1x2048xf32>
    %10 = arith.mulf %8, %9 : vector<1x2048xf32>
    %cst_3 = arith.constant 2.000000e+00 : f32
    %11 = vector.broadcast %cst_3 : f32 to vector<1x2048xf32>
    %12 = arith.subf %11, %10 : vector<1x2048xf32>
    %13 = arith.mulf %9, %12 : vector<1x2048xf32>
    %14 = arith.mulf %0, %13 : vector<1x2048xf32>
    %15 = arith.mulf %0, %14 : vector<1x2048xf32>
    %cst_4 = arith.constant -3.40282347E+38 : f32
    %cst_5 = arith.constant 3.40282347E+38 : f32
    %16 = vector.broadcast %cst_4 : f32 to vector<1x2048xf32>
    %17 = arith.maximumf %16, %15 : vector<1x2048xf32>
    %18 = vector.broadcast %cst_5 : f32 to vector<1x2048xf32>
    %19 = arith.minimumf %18, %17 : vector<1x2048xf32>
    %20 = arith.cmpf one, %19, %19 : vector<1x2048xf32>
    %cst_6 = arith.constant 0.000000e+00 : f32
    %21 = vector.broadcast %cst_6 : f32 to vector<1x2048xf32>
    %22 = arith.select %20, %21, %19 : vector<1x2048xi1>, vector<1x2048xf32>
    %c0_7 = arith.constant 0 : index
    %c0_8 = arith.constant 0 : index
    %23 = vector.load %arg2[%c0_7, %c0_8] : memref<1x2048xf32, #tpu.memory_space<vmem>>, vector<1x2048xf32>
    tpu.vector_store %arg2[%c0_7, %c0_8], %22 {strides = array<i32>} : memref<1x2048xf32, #tpu.memory_space<vmem>>, vector<1x2048xf32>,
    return
  }
  func.func @transform_0(%arg0: i32) -> (i32, i32) {
    %c0_i32 = arith.constant 0 : i32
    %c0_i32_0 = arith.constant 0 : i32
    return %arg0, %c0_i32 : i32, i32
  }
  func.func @transform_1(%arg0: i32) -> (i32, i32) {
    %c0_i32 = arith.constant 0 : i32
    %c0_i32_0 = arith.constant 0 : i32
    return %arg0, %c0_i32 : i32, i32
  }
}

</mosaic_0001>

<bundles_post_ra>
// kernel: tpu_custom_call.1
= control target key start
LH: loop header
LB: loop body
LE: loop exit
PB: predicated region body
PF: predicated region fallthrough
CT: control target
= control target key end

     0   :  { %6 = vsyncpa [#allocation3], 0  ;;  %s158_s0 = inlined_call_operand.hbm [shape: f32[1,2048], index: 0, kind: input, shape index: {}]   ;;  %s159_s1 = inlined_call_operand.hbm [shape: f32[1,2048], index: 1, kind: output, shape index: {}]  }
   0x1   :  { %7 = vsyncpa [#allocation4], 0  ;;  %s13_s8 = sshll.u32 %s158_s0, 4  ;;  %s140_s9 = smov [#allocation2]   ;;  %s14_s8 = int_to_ptr.hbm [resolvable:$true] %s13_s8 }
   0x2   :  { %s15_s10 = sshll.u32 %s140_s9, 4  ;;  %s16_s10 = int_to_ptr.vmem [resolvable:$true] %s15_s10 }
   0x3   :  { %18 = dma.hbm_to_vmem [thread:$0]  %s14_s8, 256, %s16_s10, [#allocation3]  }
   0x4   :  { %136 = dma.done.wait [#allocation3], 256  }
   0x5   :  { %137 = vsyncadd [#allocation3], 4294967040  ;;  %v23_v0 = vld [vmem:[#allocation2] sm:$0xff]  ;;  %v24_v1 = vld [vmem:[#allocation2 + $0x8] sm:$0xff]  ;;  %s141_s0 = smov [#allocation5]   ;;  %s66_s14 = sshll.u32 %s159_s1, 4  ;;  %s67_s14 = int_to_ptr.hbm [resolvable:$true] %s66_s14 }
   0x6   :  { %v25_v2 = vsub.f32 0.0, %v23_v0  ;;  %v26_v3 = vsub.f32 0.0, %v24_v1  ;;  %v33_v6 = vadd.f32 1e-08, %v23_v0  ;;  %v34_v8 = vadd.f32 1e-08, %v24_v1 }
   0x7   :  { %s64_s11 = sshll.u32 %s141_s0, 4  ;;  %s65_s11 = int_to_ptr.vmem [resolvable:$true] %s64_s11 }
   0x8   :  { %v27_v4 = vmul.f32 1.442695, %v25_v2  ;;  %v29_v5 = vmul.f32 1.442695, %v26_v3 }
   0xa   :  { %80 = vpow2.f32 %v27_v4 }
   0xb   :  { %82 = vpow2.f32 %v29_v5 }
  0x10   :  { %v81_v7 = vpop.eup %80 }
  0x11   :  { %v83_v9 = vpop.eup %82  ;;  %v31_v10 = vadd.f32 1.0, %v81_v7 }
  0x12   :  { %v32_v11 = vadd.f32 1.0, %v83_v9 }
  0x13   :  { %v35_v12 = vmul.f32 %v33_v6, %v31_v10 }
  0x14   :  { %v36_v13 = vmul.f32 %v34_v8, %v32_v11 }
  0x15   :  { %84 = vrcp.f32 %v35_v12 }
  0x16   :  { %86 = vrcp.f32 %v36_v13 }
  0x1b   :  { %v85_v14 = vpop.eup %84 }
  0x1c   :  { %v87_v15 = vpop.eup %86  ;;  %v39_v16 = vmul.f32 %v85_v14, %v35_v12 }
  0x1d   :  { %v40_v17 = vmul.f32 %v87_v15, %v36_v13 }
  0x1e   :  { %v41_v18 = vsub.f32 2.0, %v39_v16 }
  0x1f   :  { %v42_v19 = vsub.f32 2.0, %v40_v17 }
  0x20   :  { %v43_v20 = vmul.f32 %v85_v14, %v41_v18 }
  0x21   :  { %v44_v21 = vmul.f32 %v87_v15, %v42_v19 }
  0x22   :  { %v45_v22 = vmul.f32 %v43_v20, %v23_v0 }
  0x23   :  { %v46_v23 = vmul.f32 %v44_v21, %v24_v1 }
  0x24   :  { %v47_v24 = vmul.f32 %v45_v22, %v23_v0 }
  0x25   :  { %v48_v25 = vmul.f32 %v46_v23, %v24_v1 }
  0x26   :  { %v76_v26 = vclamps-f32 %v47_v24, 3.4028235e+38 }
  0x27   :  { %v77_v27 = vclamps-f32 %v48_v25, 3.4028235e+38 }
  0x28   :  { %vm53_vm0 = vcmp.ne.f32.partialorder %v76_v26, %v76_v26 }
  0x29   :  { %v55_v28 = vsel %vm53_vm0, 0.0, %v76_v26  ;;  %vm54_vm1 = vcmp.ne.f32.partialorder %v77_v27, %v77_v27 }
  0x2a   :  { %57 = vst [vmem:[#allocation5] sm:$0xff] %v55_v28  ;;  %v56_v29 = vsel %vm54_vm1, 0.0, %v77_v27 }
  0x2b   :  { %58 = vst [vmem:[#allocation5 + $0x8] sm:$0xff] %v56_v29 }
  0x2c   :  { %69 = dma.vmem_to_hbm [thread:$0]  %s65_s11, 256, %s67_s14, [#allocation4]  }
  0x2d   :  { %138 = dma.done.wait [#allocation4], 256  }
  0x2e   :  { %139 = vsyncadd [#allocation4], 4294967040 }
  0x2f   :  { %74 = vsyncpa [#allocation3], 1 }
  0x30   :  { %75 = vsyncpa [#allocation4], 1 }

</bundles_post_ra>
